<compile_context>
chip_gen: v6e
topology: v6e:2x2x1
jax: 0.10.0
libtpu: 0.0.40
codegen_flags: <defaults>
</compile_context>

<pallas_src>
import functools

import jax
import jax.numpy as jnp
from jax.experimental import pallas as pl
from jax.experimental.pallas import tpu as pltpu


_TAPS = tuple((kh, kw) for kh in (-1, 0, 1) for kw in (-1, 0, 1))


@functools.lru_cache(maxsize=None)
def _vmem_limit():
    """Generation-aware scoped-VMEM limit: ~3/4 of physical, capped at 64 MiB."""
    try:
        cap = pltpu.get_tpu_info().vmem_capacity_bytes
        return int(min(64 * 1024 * 1024, (cap * 3) // 4))
    except Exception:
        return 32 * 1024 * 1024


# ------------------------- roll-convention probe (one tiny kernel, cached) -------------------------

@functools.lru_cache(maxsize=None)
def _roll_sign():
    """Pin pltpu.roll's rotation direction so neighbour gathers are provably correct.

    Returns s such that pltpu.roll(x, (s * d) % n, axis=-1)[..., i] == x[..., (i + d) % n].
    With jnp.roll convention this is -1.  Must be primed outside any jit trace (done in main).
    """
    def kern(x_ref, o_ref):
        o_ref[...] = pltpu.roll(x_ref[...], 1, axis=1)

    x = jnp.tile(jnp.arange(128, dtype=jnp.float32)[None, :], (8, 1))
    y = pl.pallas_call(kern, out_shape=jax.ShapeDtypeStruct((8, 128), jnp.float32))(x)
    return -1 if float(y[0, 1]) == 0.0 else 1


def _shift_tap(x, d, roll_sign, hw):
    """Fetch the lane-neighbour at +d (circular; out-of-image lanes are masked by caller)."""
    if d == 0:
        return x
    return pltpu.roll(x, (roll_sign * d) % hw, axis=1)


# ------------------------- fused ResidualAttentionUnit kernel (atten1 + atten2 + skip) -------------------------

def _make_rau_kernel(H, W, C, *, split_input, fuse_add, roll_sign):
    HW = H * W

    def kernel(*refs):
        i = 0
        if split_input:
            # Channel-concat done in VMEM (halves are 8-sublane aligned) - no HBM concat.
            x1 = refs[0][0].astype(jnp.float32)
            x2 = refs[1][0].astype(jnp.float32)
            xr = jnp.concatenate([jnp.maximum(x1, 0.0), jnp.maximum(x2, 0.0)], axis=0)
            i = 2
        else:
            xr = jnp.maximum(refs[0][0].astype(jnp.float32), 0.0)
            i = 1
        if fuse_add:
            add = refs[i][0].astype(jnp.float32)
            i += 1
        wqkv1, bq1, relk1, bv1, wqkv2, bq2, relk2, bv2 = refs[i:i + 8]
        o_ref = refs[i + 8]

        # Lane-only validity masks (1, HW): shared by both attention layers and both passes.
        lane = jax.lax.broadcasted_iota(jnp.int32, (1, HW), 1)
        hh = lane // W
        ww = lane % W
        masks = [(hh >= -kh) & (hh < H - kh) & (ww >= -kw) & (ww < W - kw)
                 for (kh, kw) in _TAPS]

        def attention(xin, wqkv_ref, bq_ref, relk_ref, bv_ref):
            # Fused q|k|v 1x1 convs: one (3C, C) @ (C, HW) matmul, bf16 weights (pre-cast),
            # f32 accumulation on the MXU.
            qkv = jnp.dot(wqkv_ref[...], xin.astype(jnp.bfloat16),
                          preferred_element_type=jnp.float32)        # (3C, HW)
            q = qkv[0:C, :] + bq_ref[...]
            k = qkv[C:2 * C, :]                  # key bias folded into relk
            v = qkv[2 * C:3 * C, :]              # value bias added once at the end
            relk = relk_ref[...]                 # (9, C, 1) f32: bk + rel(kh, kw)

            def gather(val, t, kh, kw):
                if kh == 0 and kw == 0:
                    return val
                shifted = _shift_tap(val, kh * W + kw, roll_sign, HW)
                return jnp.where(masks[t], shifted, 0.0)

            def score(t, kh, kw):
                return q * (gather(k, t, kh, kw) + relk[t])

            # Pass 1: running max only (no cached score tiles -> low vreg pressure).
            m = None
            for t, (kh, kw) in enumerate(_TAPS):
                s = score(t, kh, kw)
                m = s if m is None else jnp.maximum(m, s)
            # Pass 2: recompute scores (XLU rolls / VPU muls have slack); exps go to EUP.
            den = jnp.zeros((C, HW), jnp.float32)
            num = jnp.zeros((C, HW), jnp.float32)
            for t, (kh, kw) in enumerate(_TAPS):
                e = jnp.exp(score(t, kh, kw) - m)
                den = den + e
                num = num + e * gather(v, t, kh, kw)
            # Softmax weights sum to 1 -> bv added once after the division.
            return num * pl.reciprocal(den, approx=True) + bv_ref[...]

        # PyTorch inplace ReLU: the skip connection is relu(x) (== xr).
        a1 = attention(xr, wqkv1, bq1, relk1, bv1)
        a2 = attention(jnp.maximum(a1, 0.0), wqkv2, bq2, relk2, bv2)
        out = a2 + xr
        if fuse_add:
            out = out + add                      # fused `output += resConfUnit2(context)`
        o_ref[0] = out.astype(o_ref.dtype)

    return kernel


def residual_attention_unit(inputs, p, H, W, *, add=None, out_dtype=jnp.float32):
    """Fused ResidualAttentionUnit.  `inputs` is a tuple of 1 or 2 (B, c, HW) tensors
    (logically channel-concatenated); `add` is an optional (B, C, HW) tensor summed into
    the result (fuses the block-level `output += ...`)."""
    B = inputs[0].shape[0]
    HW = H * W
    C = sum(t.shape[1] for t in inputs)
    kern = _make_rau_kernel(H, W, C,
                            split_input=len(inputs) == 2,
                            fuse_add=add is not None,
                            roll_sign=_roll_sign())

    def per_batch(shape):
        return pl.BlockSpec(shape, lambda b: (b, 0, 0))

    def rep(shape):
        nd = len(shape)
        return pl.BlockSpec(shape, lambda b, _nd=nd: (0,) * _nd)

    in_specs = [per_batch((1, t.shape[1], HW)) for t in inputs]
    args = list(inputs)
    if add is not None:
        in_specs.append(per_batch((1, C, HW)))
        args.append(add)
    for ap in (p['atten1'], p['atten2']):
        in_specs += [rep((3 * C, C)), rep((C, 1)), rep((9, C, 1)), rep((C, 1))]
        args += [ap['wqkv'], ap['bq'], ap['relk'], ap['bv']]

    return pl.pallas_call(
        kern,
        out_shape=jax.ShapeDtypeStruct((B, C, HW), out_dtype),
        grid=(B,),
        in_specs=in_specs,
        out_specs=pl.BlockSpec((1, C, HW), lambda b: (b, 0, 0)),
        compiler_params=pltpu.CompilerParams(
            dimension_semantics=("parallel",),
            vmem_limit_bytes=_vmem_limit()),
    )(*args)


# ------------------------- fused 3x3 conv + tanh kernel (both upscale heads) -------------------------

def _make_conv3x3_tanh_kernel(H, W, Cin, Cout, *, roll_sign):
    HW = H * W

    def kernel(x_ref, w_ref, b_ref, o_ref):
        # Cast the activation once; taps are lane-rolls / selects of the bf16 tile.
        x = x_ref[0].astype(jnp.bfloat16)               # (Cin, HW)
        lane = jax.lax.broadcasted_iota(jnp.int32, (1, HW), 1)
        hh = lane // W
        ww = lane % W
        zero = jnp.zeros((), jnp.bfloat16)
        acc = jnp.zeros((Cout, HW), jnp.float32)
        # TODO(synk): on v6e/v7x stack taps along the contraction dim (K >= 256) to fill
        # the 2x256^2 MXU; keep per-tap K=Cin pushes on v5e (4x128^2).
        for t, (kh, kw) in enumerate(_TAPS):
            if kh == 0 and kw == 0:
                x_t = x
            else:
                valid = (hh >= -kh) & (hh < H - kh) & (ww >= -kw) & (ww < W - kw)
                x_t = jnp.where(valid, _shift_tap(x, kh * W + kw, roll_sign, HW), zero)
            acc = acc + jnp.dot(w_ref[t], x_t, preferred_element_type=jnp.float32)
        o_ref[0] = jnp.tanh(acc + b_ref[...])

    return kernel


def conv3x3_tanh(x, w9, b, H, W):
    """x: (B, Cin, HW); w9: (9, Cout_pad, Cin) bf16 tap-major; b: (Cout_pad, 1) f32."""
    B, Cin, HW = x.shape
    Cout = w9.shape[1]
    kern = _make_conv3x3_tanh_kernel(H, W, Cin, Cout, roll_sign=_roll_sign())
    return pl.pallas_call(
        kern,
        out_shape=jax.ShapeDtypeStruct((B, Cout, HW), jnp.float32),
        grid=(B,),
        in_specs=[
            pl.BlockSpec((1, Cin, HW), lambda bb: (bb, 0, 0)),
            pl.BlockSpec((9, Cout, Cin), lambda bb: (0, 0, 0)),
            pl.BlockSpec((Cout, 1), lambda bb: (0, 0)),
        ],
        out_specs=pl.BlockSpec((1, Cout, HW), lambda bb: (bb, 0, 0)),
        compiler_params=pltpu.CompilerParams(
            dimension_semantics=("parallel",),
            vmem_limit_bytes=_vmem_limit()),
    )(x, w9, b)


# ------------------------- module forward (thin JAX glue) -------------------------

def _pixel_shuffle_nchw(y, r):
    B, crr, H, W = y.shape
    cout = crr // (r * r)
    y = y.reshape(B, cout, r, r, H, W)
    y = y.transpose(0, 1, 4, 2, 5, 3)
    return y.reshape(B, cout, H * r, W * r)


def feature_fusion_block_v2(dt, upt, dt_1, dt_2, params, scale=2):
    """Inputs NCHW (PyTorch convention); outputs NCHW.  init_scale=False, scale != 1 path."""
    # TODO(synk): the `upt is None` branch (conv_init) and the scale==1 branch (Conv3x3 class
    # is not defined in the reference source) are not exercised here.
    B, ch_dt, H, W = dt.shape
    features = ch_dt + upt.shape[1]
    # bf16 intermediates when the channel count is a native bf16 tile multiple; the f32
    # accumulation stays inside the kernels, only the inter-kernel HBM traffic is halved.
    act_dtype = jnp.bfloat16 if (features % 16 == 0 and (H * W) % 128 == 0) else jnp.float32
    flat = lambda t: t.reshape(B, t.shape[1], H * W)

    r1 = residual_attention_unit((flat(dt), flat(upt)), params['rau1'], H, W,
                                 out_dtype=act_dtype)
    s = residual_attention_unit((flat(dt_1), flat(dt_2)), params['rau2'], H, W,
                                add=r1, out_dtype=act_dtype)          # rau2(context) + rau1(...)
    o = residual_attention_unit((s,), params['rau3'], H, W, out_dtype=act_dtype)

    # upscale_1 (1*scale^2 ch) and upscale_2 ((F//4)*4 ch) fused into one conv3x3+tanh call
    # (Cout zero-padded to a multiple of 8 sublanes for unmasked stores, sliced off here).
    y = conv3x3_tanh(o, params['up_w9'], params['up_b'], H, W)        # (B, Cout_pad, HW)
    n_depth = scale * scale
    n_total = n_depth + (features // 4) * 4
    y = y[:, :n_total].reshape(B, n_total, H, W)
    output_depth = _pixel_shuffle_nchw(y[:, :n_depth], scale)         # (B, 1, H*scale, W*scale)
    output_up = _pixel_shuffle_nchw(y[:, n_depth:], 2)                # (B, F//4, 2H, 2W)
    return output_depth, output_up


# ------------------------- parameter init (PyTorch layouts) + kernel-ready prep -------------------------

def init_params(key, features, scale=2):
    def attn_params(k):
        ks = jax.random.split(k, 8)
        s = 1.0 / jnp.sqrt(features)
        return {
            'wq': jax.random.normal(ks[0], (features, features), jnp.float32) * s,  # (Cout, Cin)
            'bq': jax.random.normal(ks[1], (features,), jnp.float32) * 0.1,
            'wk': jax.random.normal(ks[2], (features, features), jnp.float32) * s,
            'bk': jax.random.normal(ks[3], (features,), jnp.float32) * 0.1,
            'wv': jax.random.normal(ks[4], (features, features), jnp.float32) * s,
            'bv': jax.random.normal(ks[5], (features,), jnp.float32) * 0.1,
            'rel_h': jax.random.normal(ks[6], (3,), jnp.float32),
            'rel_w': jax.random.normal(ks[7], (3,), jnp.float32),
        }

    def rau_params(k):
        k1, k2 = jax.random.split(k)
        return {'atten1': attn_params(k1), 'atten2': attn_params(k2)}

    keys = jax.random.split(key, 7)
    s = 1.0 / jnp.sqrt(9.0 * features)
    n1 = scale * scale                 # upscale_1: Conv2d(F, 1*scale^2, 3)
    n2 = (features // 4) * 4           # upscale_2: Conv2d(F, (F//4)*2^2, 3)
    return {
        'rau1': rau_params(keys[0]),
        'rau2': rau_params(keys[1]),
        'rau3': rau_params(keys[2]),
        'up1_w': jax.random.normal(keys[3], (n1, features, 3, 3), jnp.float32) * s,  # (Cout,Cin,3,3)
        'up1_b': jax.random.normal(keys[4], (n1,), jnp.float32) * 0.1,
        'up2_w': jax.random.normal(keys[5], (n2, features, 3, 3), jnp.float32) * s,
        'up2_b': jax.random.normal(keys[6], (n2,), jnp.float32) * 0.1,
    }


def _prep_attention(p):
    C = p['wq'].shape[0]
    half = C // 2
    # rel[kh, kw, c]: first half channels get rel_h[kh], second half rel_w[kw] (PyTorch split).
    rel = jnp.concatenate([
        jnp.broadcast_to(p['rel_h'][:, None, None], (3, 3, half)),
        jnp.broadcast_to(p['rel_w'][None, :, None], (3, 3, C - half)),
    ], axis=-1)
    # The reference zero-pads the *input* of the biased 1x1 k/v convs, so padded k == bk:
    # fold bk into relk; padded v == bv: add bv once after the softmax division.
    relk = rel.reshape(9, C) + p['bk'][None, :]
    return {
        'wqkv': jnp.concatenate([p['wq'], p['wk'], p['wv']], axis=0).astype(jnp.bfloat16),
        'bq': p['bq'].reshape(C, 1),
        'relk': relk[:, :, None],                                     # (9, C, 1) f32
        'bv': p['bv'].reshape(C, 1),
    }


def prepare_params(raw, features):
    prep_rau = lambda r: {'atten1': _prep_attention(r['atten1']),
                          'atten2': _prep_attention(r['atten2'])}
    w = jnp.concatenate([raw['up1_w'], raw['up2_w']], axis=0)         # (n_total, F, 3, 3)
    b = jnp.concatenate([raw['up1_b'], raw['up2_b']], axis=0)
    n_total = w.shape[0]
    n_pad = (-n_total) % 8                                            # sublane-align Cout
    if n_pad:
        w = jnp.concatenate([w, jnp.zeros((n_pad, features, 3, 3), w.dtype)], axis=0)
        b = jnp.concatenate([b, jnp.zeros((n_pad,), b.dtype)], axis=0)
    cout = n_total + n_pad
    w9 = jnp.transpose(w, (2, 3, 0, 1)).reshape(9, cout, features).astype(jnp.bfloat16)
    return {'rau1': prep_rau(raw['rau1']), 'rau2': prep_rau(raw['rau2']),
            'rau3': prep_rau(raw['rau3']),
            'up_w9': w9, 'up_b': b.reshape(cout, 1)}


# ------------------------- main -------------------------

if __name__ == "__main__":
    B, features, H, W = 2, 16, 16, 16
    scale = 2
    half = features // 2

    _roll_sign()   # prime the cached roll-convention probe eagerly (outside any jit trace)

    key = jax.random.PRNGKey(0)
    kp, k1, k2, k3, k4 = jax.random.split(key, 5)
    params = prepare_params(init_params(kp, features, scale), features)

    dt = jax.random.normal(k1, (B, half, H, W), jnp.float32)
    upt = jax.random.normal(k2, (B, half, H, W), jnp.float32)
    dt_1 = jax.random.normal(k3, (B, half, H, W), jnp.float32)
    dt_2 = jax.random.normal(k4, (B, half, H, W), jnp.float32)

    fwd = jax.jit(functools.partial(feature_fusion_block_v2, scale=scale))
    out_depth, out_up = fwd(dt, upt, dt_1, dt_2, params)
    jax.block_until_ready((out_depth, out_up))

    assert out_depth.shape == (B, 1, H * scale, W * scale), out_depth.shape
    assert out_up.shape == (B, features // 4, H * 2, W * 2), out_up.shape
    assert bool(jnp.all(jnp.isfinite(out_depth))) and bool(jnp.all(jnp.isfinite(out_up)))
    print("KERNEL_OK")
</pallas_src>

<mosaic_0001>
module attributes {stable_mosaic.version = 11 : i64} {
  func.func @kern(%arg0: memref<8x128xf32, #tpu.memory_space<vmem>>, %arg1: memref<8x128xf32, #tpu.memory_space<vmem>>) attributes {dimension_semantics = [], scalar_prefetch = 0 : i64, scratch_operands = 0 : i64, tpu.core_type = #tpu.core_type<tc>} {
    %c0 = arith.constant 0 : index
    %c0_0 = arith.constant 0 : index
    %0 = vector.load %arg0[%c0, %c0_0] : memref<8x128xf32, #tpu.memory_space<vmem>>, vector<8x128xf32>
    %c1_i32 = arith.constant 1 : i32
    %1 = tpu.dynamic_rotate %0 by %c1_i32 dim 1 : vector<8x128xf32>, i32 -> vector<8x128xf32>
    %c0_1 = arith.constant 0 : index
    %c0_2 = arith.constant 0 : index
    %2 = vector.load %arg1[%c0_1, %c0_2] : memref<8x128xf32, #tpu.memory_space<vmem>>, vector<8x128xf32>
    tpu.vector_store %arg1[%c0_1, %c0_2], %1 {strides = array<i32>} : memref<8x128xf32, #tpu.memory_space<vmem>>, vector<8x128xf32>,
    return
  }
}

</mosaic_0001>

<bundles_post_ra>
// kernel: tpu_custom_call.1
= control target key start
LH: loop header
LB: loop body
LE: loop exit
PB: predicated region body
PF: predicated region fallthrough
CT: control target
= control target key end

     0   :  { %6 = vsyncpa [#allocation3], 0  ;;  %s106_s0 = inlined_call_operand.hbm [shape: f32[8,128], index: 0, kind: input, shape index: {}]   ;;  %s107_s1 = inlined_call_operand.hbm [shape: f32[8,128], index: 1, kind: output, shape index: {}]  }
   0x1   :  { %7 = vsyncpa [#allocation4], 0  ;;  %s87_s6 = smov [#allocation2]  }
   0x2   :  { %s14_s7 = sshll.u32 %s87_s6, 4  ;;  %s15_s7 = int_to_ptr.vmem [resolvable:$true] %s14_s7 }
   0x3   :  { %s51_s8 = scalar_lea.vmem %s15_s7, 128  ;;  %p56_p1 = scmp.lt.s32.totalorder %s15_s7, %s15_s7 }
   0x4   :  { %p52_p0 = scmp.ne.s32.totalorder %s15_s7, %s51_s8  ;;  %p57_p2 = scmp.lt.s32.totalorder %s51_s8, %s51_s8 }
   0x6   :  { %p58_p3 = por %p57_p2, %p56_p1 }
   0x8   :  { %p59_p4 = pnand %p58_p3, %p52_p0 }
   0xa   :  { %62 = shalt.err (!%p59_p4)
}
   0xb   :  { %17 = dma.hbm_to_vmem [thread:$0]  %s106_s0, 128, %s15_s7, [#allocation3]  }
   0xc   :  { %83 = dma.done.wait [#allocation3], 128  }
   0xd   :  { %84 = vsyncadd [#allocation3], 4294967168  ;;  %v21_v0 = vld [vmem:[#allocation2] sm:$0xff]  ;;  %s88_s11 = smov 1   ;;  %s89_s12 = smov [#allocation5]  }
   0xe   :  { %22 = vrot.lane.b32.xlu0 %v21_v0, %s88_s11  ;;  %s31_s13 = sshll.u32 %s89_s12, 4  ;;  %s32_s13 = int_to_ptr.vmem [resolvable:$true] %s31_s13 }
   0xf   :  { %s63_s14 = scalar_lea.vmem %s32_s13, 128  ;;  %p68_p6 = scmp.lt.s32.totalorder %s32_s13, %s32_s13 }
  0x10   :  { %p64_p5 = scmp.ne.s32.totalorder %s32_s13, %s63_s14  ;;  %p69_p7 = scmp.lt.s32.totalorder %s63_s14, %s63_s14 }
  0x12   :  { %p70_p8 = por %p69_p7, %p68_p6 }
  0x14   :  { %p71_p9 = pnand %p70_p8, %p64_p5 }
  0x80   :  { %v23_v1 = vpop.permute.xlu0 %22 }
  0x81   :  { %24 = vst [vmem:[#allocation5] sm:$0xff] %v23_v1 }
  0x82   :  { %74 = shalt.err (!%p71_p9)
}
  0x83   :  { %34 = dma.vmem_to_hbm [thread:$0]  %s32_s13, 128, %s107_s1, [#allocation4]  }
  0x84   :  { %85 = dma.done.wait [#allocation4], 128  }
  0x85   :  { %86 = vsyncadd [#allocation4], 4294967168 }
  0x86   :  { %38 = vsyncpa [#allocation3], 1 }
  0x87   :  { %39 = vsyncpa [#allocation4], 1 }

</bundles_post_ra>
